<compile_context>
chip_gen: v7x
topology: tpu7x:2x2x1
jax: 0.10.0
libtpu: 0.0.40
codegen_flags: <defaults>
</compile_context>

<pallas_src>
import jax
import jax.numpy as jnp
from jax import lax
from jax.experimental import pallas as pl
from jax.experimental.pallas import tpu as pltpu


def _round_up(v: int, m: int) -> int:
    return (v + m - 1) // m * m


# ---------------------------------------------------------------------------
# One-time weight-space collapse of the whole module into a single affine map.
# ---------------------------------------------------------------------------
def linearize_params(params, h, w):
    """Collapse AddCatModel into  y = x.reshape(N, 3*H*W) @ A + b.

    Pure weight-space algebra (no data pass); exact up to f32 rounding.  Compute
    once per (weights, H, W) and cache -- it is independent of the batch.
    """
    ho, wo = h - 4, w - 4                      # spatial extent after two VALID 3x3 convs
    assert ho >= 1 and wo >= 1, "input too small for two VALID 3x3 convs"
    hp = lax.Precision.HIGHEST                 # keep the tiny prep contractions exact f32

    # Stage 1:  cat(op1,op2)(x) + cat(op3,op4)(x) == conv(x, wc) + bc.
    wc = (jnp.concatenate([params["w1"], params["w2"]], axis=0) +
          jnp.concatenate([params["w3"], params["w4"]], axis=0))          # (8,3,3,3)
    bc = (jnp.concatenate([params["b1"], params["b2"]]) +
          jnp.concatenate([params["b3"], params["b4"]]))                  # (8,)
    w5, b5 = params["w5"], params["b5"]                                   # (16,8,3,3),(16,)
    cout = w5.shape[0]
    cin = wc.shape[1]

    # Compose the two 3x3 cross-correlations into one 5x5:
    #   comp[o,ci,p,q] = sum_{c, dy+ey=p, dx+ex=q} w5[o,c,dy,dx] * wc[c,ci,ey,ex]
    comp = jnp.zeros((cout, cin, 5, 5), jnp.float32)
    for dy in range(3):
        for dx in range(3):
            for ey in range(3):
                for ex in range(3):
                    comp = comp.at[:, :, dy + ey, dx + ex].add(
                        jnp.einsum("oc,ci->oi", w5[:, :, dy, dx],
                                   wc[:, :, ey, ex], precision=hp))

    # Stage-1 bias is spatially constant under a VALID conv -> fold into stage-2 bias.
    b5_eff = b5 + jnp.einsum("ocyx,c->o", w5, bc, precision=hp)           # (16,)

    # Mean-pool over the (ho, wo) conv-output positions: the weight that input pixel
    # (i, j) contributes to channel o is the average of the 5x5 taps reaching it.
    m = jnp.zeros((cout, cin, h, w), jnp.float32)
    for p in range(5):
        for q in range(5):
            m = m.at[:, :, p:p + ho, q:q + wo].add(comp[:, :, p, q][:, :, None, None])
    m = m / float(ho * wo)                                                # (16,3,h,w)

    # Fold the fc layer:  y = pooled @ fc_w.T + fc_b.
    fc_w, fc_b = params["fc_w"], params["fc_b"]                           # (K,16),(K,)
    a = jnp.dot(m.reshape(cout, cin * h * w).T, fc_w.T, precision=hp)     # (3*h*w, K)
    b = fc_b + jnp.dot(fc_w, b5_eff, precision=hp)                        # (K,)
    return a, b


# ---------------------------------------------------------------------------
# Pallas kernel: tiled (N, Kred) @ (Kred, C) MXU GEMM + bias.
# ---------------------------------------------------------------------------
def _affine_kernel(x_ref, a_ref, b_ref, o_ref, acc_ref):
    k = pl.program_id(2)

    @pl.when(k == 0)
    def _():
        acc_ref[...] = jnp.zeros_like(acc_ref)

    acc_ref[...] += jnp.dot(x_ref[...], a_ref[...],
                            preferred_element_type=jnp.float32)

    @pl.when(k == pl.num_programs(2) - 1)
    def _():
        o_ref[...] = (acc_ref[...] + b_ref[...]).astype(o_ref.dtype)


def addcat_forward(x_nchw, params, *, batch_tile=128, class_tile=256, k_tile=1536):
    """AddCatModel forward.  x_nchw: (N, 3, H, W) f32 -> (N, num_class) f32."""
    n, cin, h, w = x_nchw.shape
    assert cin == 3, "AddCatModel expects 3 input channels"
    num_class = params["fc_w"].shape[0]

    # One-time (per weights + spatial size) affine collapse; cache in production.
    a, b = linearize_params(params, h, w)                   # (kdim, K), (K,)
    kdim = a.shape[0]                                       # 3*H*W

    # ---- tile sizing / padding (lane- and MXU-friendly, remainder-safe) ----
    tn = min(class_tile, _round_up(num_class, 128))         # output-class tile
    cls_pad = _round_up(num_class, tn)
    tk = min(k_tile, _round_up(kdim, 128))                  # reduction tile
    kdim_pad = _round_up(kdim, tk)
    if n >= batch_tile:
        tm, n_pad = batch_tile, _round_up(n, batch_tile)
    else:
        tm, n_pad = n, n                                    # whole batch in one block

    x_flat = x_nchw.reshape(n, kdim)
    x_flat = jnp.pad(x_flat, ((0, n_pad - n), (0, kdim_pad - kdim)))
    a_pad = jnp.pad(a, ((0, kdim_pad - kdim), (0, cls_pad - num_class)))
    b_pad = jnp.pad(b, (0, cls_pad - num_class)).reshape(1, cls_pad)

    grid = (n_pad // tm, cls_pad // tn, kdim_pad // tk)
    out = pl.pallas_call(
        _affine_kernel,
        out_shape=jax.ShapeDtypeStruct((n_pad, cls_pad), jnp.float32),
        grid=grid,
        in_specs=[
            pl.BlockSpec((tm, tk), lambda i, j, k: (i, k)),   # activations
            pl.BlockSpec((tk, tn), lambda i, j, k: (k, j)),   # folded weights
            pl.BlockSpec((1, tn), lambda i, j, k: (0, j)),    # folded bias
        ],
        out_specs=pl.BlockSpec((tm, tn), lambda i, j, k: (i, j)),
        scratch_shapes=[pltpu.VMEM((tm, tn), jnp.float32)],
        compiler_params=pltpu.CompilerParams(
            dimension_semantics=("parallel", "parallel", "arbitrary"),
            vmem_limit_bytes=48 * 1024 * 1024,   # well above the ~6 MiB actually used
        ),
    )(x_flat, a_pad, b_pad)
    return out[:n, :num_class]


# ---------------------------------------------------------------------------
# Faithful plain-JAX reference (exact f32) for verification.
# ---------------------------------------------------------------------------
def _reference(x_nchw, p):
    hp = lax.Precision.HIGHEST
    dn = lax.conv_dimension_numbers(x_nchw.shape, p["w1"].shape,
                                    ("NCHW", "OIHW", "NCHW"))

    def conv(x, wgt, bias):
        y = lax.conv_general_dilated(x, wgt, (1, 1), "VALID",
                                     dimension_numbers=dn, precision=hp)
        return y + bias.reshape(1, -1, 1, 1)

    x1 = conv(x_nchw, p["w1"], p["b1"])
    x2 = conv(x_nchw, p["w2"], p["b2"])
    x3 = conv(x_nchw, p["w3"], p["b3"])
    x4 = conv(x_nchw, p["w4"], p["b4"])
    cat1 = jnp.concatenate([x1, x2], axis=1)
    cat2 = jnp.concatenate([x3, x4], axis=1)
    x5 = conv(cat1 + cat2, p["w5"], p["b5"])
    pooled = jnp.mean(x5, axis=(2, 3))
    return jnp.dot(pooled, p["fc_w"].T, precision=hp) + p["fc_b"]


if __name__ == "__main__":
    N, CIN, H, W = 2, 3, 16, 16
    NUM_CLASS = 1000            # as in the module; exercises the 1000 -> 1024 padding

    key = jax.random.PRNGKey(0)
    keys = jax.random.split(key, 13)

    def rnd(kk, shape, scale=0.1):
        return jax.random.normal(kk, shape, dtype=jnp.float32) * scale

    params = {
        "w1": rnd(keys[0], (2, 3, 3, 3)),   "b1": rnd(keys[1], (2,)),
        "w2": rnd(keys[2], (6, 3, 3, 3)),   "b2": rnd(keys[3], (6,)),
        "w3": rnd(keys[4], (4, 3, 3, 3)),   "b3": rnd(keys[5], (4,)),
        "w4": rnd(keys[6], (4, 3, 3, 3)),   "b4": rnd(keys[7], (4,)),
        "w5": rnd(keys[8], (16, 8, 3, 3)),  "b5": rnd(keys[9], (16,)),
        "fc_w": rnd(keys[10], (NUM_CLASS, 16)),
        "fc_b": rnd(keys[11], (NUM_CLASS,)),
    }
    x = jax.random.normal(keys[12], (N, CIN, H, W), dtype=jnp.float32)

    out = jax.block_until_ready(addcat_forward(x, params))
    assert out.shape == (N, NUM_CLASS)

    ref = _reference(x, params)

    # (1) The affine collapse itself is exact (pure algebra, checked in plain f32 XLA).
    a, b = linearize_params(params, H, W)
    lin = jnp.dot(x.reshape(N, -1), a, precision=lax.Precision.HIGHEST) + b
    err_lin = float(jnp.max(jnp.abs(lin - ref)))
    assert jnp.allclose(lin, ref, atol=1e-4, rtol=1e-4), f"linearization err {err_lin}"

    # (2) The Pallas kernel matches the module; tolerance only has to cover the MXU's
    #     f32 matmul pass decomposition (a structural bug would show up as O(1) error).
    err = float(jnp.max(jnp.abs(out - ref)))
    assert jnp.allclose(out, ref, atol=2e-2, rtol=2e-2), f"kernel err {err}"
    print("KERNEL_OK")
</pallas_src>

<mosaic_0001>
module attributes {stable_mosaic.version = 11 : i64} {
  func.func @_affine_kernel(%arg0: i32, %arg1: i32, %arg2: i32, %arg3: memref<2x768xf32, #tpu.memory_space<vmem>>, %arg4: memref<768x256xf32, #tpu.memory_space<vmem>>, %arg5: memref<1x256xf32, #tpu.memory_space<vmem>>, %arg6: memref<2x256xf32, #tpu.memory_space<vmem>>, %arg7: memref<2x256xf32, #tpu.memory_space<vmem>>) attributes {dimension_semantics = [#tpu.dimension_semantics<parallel>, #tpu.dimension_semantics<parallel>, #tpu.dimension_semantics<arbitrary>], iteration_bounds = array<i64: 1, 4, 1>, scalar_prefetch = 0 : i64, scratch_operands = 1 : i64, tpu.core_type = #tpu.core_type<tc>, window_params = [{transform_indices = @transform_0, window_bounds = array<i64: 2, 768>}, {transform_indices = @transform_1, window_bounds = array<i64: 768, 256>}, {transform_indices = @transform_2, window_bounds = array<i64: 1, 256>}, {transform_indices = @transform_3, window_bounds = array<i64: 2, 256>}]} {
    %c0_i32 = arith.constant 0 : i32
    %0 = arith.cmpi eq, %arg2, %c0_i32 : i32
    %1 = arith.extui %0 : i1 to i32
    %c0_i32_0 = arith.constant 0 : i32
    %2 = arith.cmpi ne, %1, %c0_i32_0 : i32
    scf.if %2 {
      %cst_10 = arith.constant 0.000000e+00 : f32
      %12 = vector.broadcast %cst_10 : f32 to vector<2x256xf32>
      %c0_11 = arith.constant 0 : index
      %c0_12 = arith.constant 0 : index
      %13 = vector.load %arg7[%c0_11, %c0_12] : memref<2x256xf32, #tpu.memory_space<vmem>>, vector<2x256xf32>
      tpu.vector_store %arg7[%c0_11, %c0_12], %12 {strides = array<i32>} : memref<2x256xf32, #tpu.memory_space<vmem>>, vector<2x256xf32>,
    } else {
    }
    %c0 = arith.constant 0 : index
    %c0_1 = arith.constant 0 : index
    %3 = vector.load %arg7[%c0, %c0_1] : memref<2x256xf32, #tpu.memory_space<vmem>>, vector<2x256xf32>
    %c0_2 = arith.constant 0 : index
    %c0_3 = arith.constant 0 : index
    %4 = vector.load %arg3[%c0_2, %c0_3] : memref<2x768xf32, #tpu.memory_space<vmem>>, vector<2x768xf32>
    %c0_4 = arith.constant 0 : index
    %c0_5 = arith.constant 0 : index
    %5 = vector.load %arg4[%c0_4, %c0_5] : memref<768x256xf32, #tpu.memory_space<vmem>>, vector<768x256xf32>
    %cst = arith.constant dense<0.000000e+00> : vector<2x256xf32>
    %6 = tpu.matmul %4, %5, %cst {dimension_numbers = #tpu.dot_dimension_numbers<[1], [0], [0], [1], [0, 0, 1, 1], [], []>} : vector<2x768xf32>, vector<768x256xf32>, vector<2x256xf32> -> vector<2x256xf32>
    %7 = arith.addf %3, %6 : vector<2x256xf32>
    %c0_6 = arith.constant 0 : index
    %c0_7 = arith.constant 0 : index
    %8 = vector.load %arg7[%c0_6, %c0_7] : memref<2x256xf32, #tpu.memory_space<vmem>>, vector<2x256xf32>
    tpu.vector_store %arg7[%c0_6, %c0_7], %7 {strides = array<i32>} : memref<2x256xf32, #tpu.memory_space<vmem>>, vector<2x256xf32>,
    %c0_i32_8 = arith.constant 0 : i32
    %9 = arith.cmpi eq, %arg2, %c0_i32_8 : i32
    %10 = arith.extui %9 : i1 to i32
    %c0_i32_9 = arith.constant 0 : i32
    %11 = arith.cmpi ne, %10, %c0_i32_9 : i32
    scf.if %11 {
      %c0_10 = arith.constant 0 : index
      %c0_11 = arith.constant 0 : index
      %12 = vector.load %arg7[%c0_10, %c0_11] : memref<2x256xf32, #tpu.memory_space<vmem>>, vector<2x256xf32>
      %c0_12 = arith.constant 0 : index
      %c0_13 = arith.constant 0 : index
      %13 = vector.load %arg5[%c0_12, %c0_13] : memref<1x256xf32, #tpu.memory_space<vmem>>, vector<1x256xf32>
      %14 = vector.broadcast %13 : vector<1x256xf32> to vector<2x256xf32>
      %15 = arith.addf %12, %14 : vector<2x256xf32>
      %c0_14 = arith.constant 0 : index
      %c0_15 = arith.constant 0 : index
      %16 = vector.load %arg6[%c0_14, %c0_15] : memref<2x256xf32, #tpu.memory_space<vmem>>, vector<2x256xf32>
      tpu.vector_store %arg6[%c0_14, %c0_15], %15 {strides = array<i32>} : memref<2x256xf32, #tpu.memory_space<vmem>>, vector<2x256xf32>,
    } else {
    }
    return
  }
  func.func @transform_0(%arg0: i32, %arg1: i32, %arg2: i32) -> (i32, i32) {
    %c0_i32 = arith.constant 0 : i32
    return %arg0, %arg2 : i32, i32
  }
  func.func @transform_1(%arg0: i32, %arg1: i32, %arg2: i32) -> (i32, i32) {
    %c0_i32 = arith.constant 0 : i32
    return %arg2, %arg1 : i32, i32
  }
  func.func @transform_2(%arg0: i32, %arg1: i32, %arg2: i32) -> (i32, i32) {
    %c0_i32 = arith.constant 0 : i32
    %c0_i32_0 = arith.constant 0 : i32
    return %c0_i32, %arg1 : i32, i32
  }
  func.func @transform_3(%arg0: i32, %arg1: i32, %arg2: i32) -> (i32, i32) {
    %c0_i32 = arith.constant 0 : i32
    return %arg0, %arg1 : i32, i32
  }
}

</mosaic_0001>

<bundles_post_ra>
// kernel: tpu_custom_call.1
= control target key start
LH: loop header
LB: loop body
LE: loop exit
PB: predicated region body
PF: predicated region fallthrough
CT: control target
= control target key end

     0   :  { %s1884_s0 = inlined_call_operand.hbm [shape: f32[2,768], index: 0, kind: input, shape index: {}]   ;;  %s1885_s1 = inlined_call_operand.hbm [shape: f32[768,1024], index: 1, kind: input, shape index: {}]   ;;  %s1886_s2 = inlined_call_operand.hbm [shape: f32[1,1024], index: 2, kind: input, shape index: {}]   ;;  %s1887_s3 = inlined_call_operand.hbm [shape: f32[2,1024], index: 3, kind: output, shape index: {}]  }
   0x1   :  { %1893 = sst [smem:[#allocation13_spill]] %s1885_s1 }
   0x2   :  { %8 = vsyncpa [#allocation4], 0 }
   0x3   :  { %9 = vsyncpa [#allocation7], 0 }
   0x4   :  { %11 = vsyncpa [#allocation7 + $0x1], 0 }
   0x5   :  { %12 = vsyncpa [#allocation5], 0 }
   0x6   :  { %14 = vsyncpa [#allocation5 + $0x1], 0  ;;  %s1415_s12 = smov 0   ;;  %s1417_s13 = smov 0  }
   0x7   :  { %s1419_s14 = smov 0   ;;  %s1421_s15 = smov 0  }
   0x8   :  { %s1423_s16 = smov 0   ;;  %s1425_s17 = smov 0  }
   0x9 LB: > { %s35_s18 = sadd.s32 1, %s1380_s16  ;;  %s76_s19 = sadd.s32 1, %s1372_s14  ;;  %s1384_s17 = sphi %s1425_s17, %s20_s17   ;;  %s1380_s16 = sphi %s1423_s16, %s1912_s16   ;;  %s1376_s15 = sphi %s1421_s15, %s1911_s15   ;;  %s1372_s14 = sphi %s1419_s14, %s1910_s14   ;;  %s1368_s13 = sphi %s1417_s13, %s1909_s13   ;;  %s1364_s12 = sphi %s1415_s12, %s1908_s12  }
   0xa   : > { %p37_p0 = scmp.ge.s32.totalorder %s35_s18, 4  ;;  %p83_p1 = scmp.ne.s32.totalorder %s1372_s14, %s1368_s13 }
   0xb   : > { %p84_p2 = scmp.eq.s32.totalorder %s1384_s17, 0  ;;  %p1152_p4 = scmp.lt.s32.totalorder %s1384_s17, 4 }
   0xc   : > { %s1914_s18 = smov (%p37_p0, %s35_s18), 0  ;;  %s183_s21 = sand.u32 1, %s1384_s17  }
   0xd   : > { %p85_p3 = por %p84_p2, %p83_p1  ;;  %s72_s20 = ssub.s32 %s1380_s16, %s1914_s18 }
   0xe   : > { %p74_p5 = scmp.eq.s32.totalorder %s72_s20, 0  ;;  %s185_s22 = sand.u32 1, %s1372_s14  }
   0xf   : > { %s925_s23 = sshll.u32 %s1380_s16, 8  ;;  %s1124_s25 = smul.u32 1536, %s185_s22 }
  0x10   : > { %s1462_s24 = scalar_select %p74_p5, %s1372_s14, %s76_s19  }
  0x11   : > { %s1894_s1 = sld [smem:[#allocation13_spill]]  ;;  %p1471_p6 = pnand %p1152_p4, %p85_p3 }
  0x12   : > { %s187_s30 = scalar_lea.vmem [#allocation6], %s1124_s25  ;;  %s1477_s5 = scalar_lea.sflag [#allocation7], %s183_s21 }
  0x13   : > { %s197_s4 = sshll.u32 %s187_s30, 4  ;;  %p1212_p8 = pneg %p1471_p6  ;;  %s1475_s4 = int_to_ptr.vmem [resolvable:$true] %s197_s4 }
  0x17   : > { %s1469_s28 = scalar_lea.hbm %s1894_s1, %s925_s23  ;;  %s1215_s9 = scalar_lea.hbm %s1894_s1, 98304 }
  0x18   : > { %s1210_s6 = scalar_lea.hbm %s1469_s28, 24576  ;;  %p1216_p11 = scmp.lt.u32.totalorder %s1469_s28, %s1894_s1 }
  0x19   : > { %p1211_p7 = scmp.ne.s32.totalorder %s1469_s28, %s1210_s6  ;;  %p1217_p12 = scmp.lt.u32.totalorder %s1215_s9, %s1210_s6 }
  0x1a   : > { %p1219_p0 = scmp.lt.u32.totalorder %s1210_s6, %s1469_s28 }
  0x1b   : > { %p1213_p9 = pnand %p1212_p8, %p1211_p7  ;;  %p1218_p13 = por %p1217_p12, %p1216_p11 }
  0x1d   : > { %p1214_p10 = pneg %p1213_p9  ;;  %p1220_p2 = por %p1219_p0, %p1218_p13 }
  0x1f   : > { %p1221_p3 = pnand %p1220_p2, %p1214_p10 }
  0x21   : > { %1224 = shalt.err (!%p1221_p3)
}
  0x22   : > { %s1225_s19 = scalar_lea.vmem %s1475_s4, 24576  ;;  %s1386_s20 = smov [#allocation6]  }
  0x23   : > { %p1226_p4 = scmp.ne.s32.totalorder %s1475_s4, %s1225_s19  ;;  %s1230_s21 = sshll.u32 %s1386_s20, 4  ;;  %s1231_s21 = int_to_ptr.vmem [resolvable:$false] %s1230_s21 }
  0x24   : > { %s1232_s23 = scalar_lea.vmem %s1231_s21, 49152  ;;  %p1233_p9 = scmp.lt.s32.totalorder %s1475_s4, %s1231_s21 }
  0x25   : > { %p1228_p5 = pnand %p1226_p4, %p1212_p8  ;;  %p1234_p11 = scmp.lt.s32.totalorder %s1232_s23, %s1225_s19 }
  0x27   : > { %p1229_p7 = pneg %p1228_p5  ;;  %p1235_p12 = por %p1234_p11, %p1233_p9 }
  0x29   : > { %p1236_p13 = pnand %p1235_p12, %p1229_p7 }
  0x2b   : > { %1239 = shalt.err (!%p1236_p13)
}
  0x2c   : > { %s1387_s25 = smov 1024   ;;  %s1388_s26 = smov 256  }
  0x2d   : > { %s1389_s27 = smov 16   ;;  %s1506_s30 = sadd.s32 4294967295, %s1384_s17  }
  0x2e   : > { %1143 = dma.hbm_to_vmem [thread:$0]  (!%p1471_p6), %s1469_s28, 24576, %s1475_s4, %s1477_s5, %s1387_s25, %s1388_s26, %s1389_s27  }
  0x2f   : > { %s906_s6 = sadd.s32 4294967294, %s1384_s17   ;;  %p89_p10 = scmp.ne.s32.totalorder %s1368_s13, %s1364_s12 }
  0x30   : > { %p1888_p0 = scmp.eq.s32.totalorder %s1506_s30, 0  ;;  %p141_p2 = scmp.eq.s32.totalorder %s1506_s30, 3 }
  0x31   : > { %p147_p3 = scmp.eq.s32.totalorder %s906_s6, 3  ;;  %p907_p5 = scmp.ge.s32.totalorder %s1384_s17, 1 }
  0x32   : > { %p1515_p4 = por %p1888_p0, %p89_p10  ;;  %p1523_p7 = por %p141_p2, %p83_p1 }
  0x33   : > { %p1527_p9 = por %p147_p3, %p89_p10  ;;  %p154_p11 = scmp.lt.s32.totalorder %s1384_s17, 5 }
  0x34   : > { %s1896_s7 = scalar_select %p1515_p4, 1, 0 }
  0x35   : > { %s1897_s28 = scalar_select %p1523_p7, 1, 0 }
  0x36   : > { %s1898_s4 = scalar_select %p1527_p9, 1, 0 }
  0x37   : > { %s912_s8 = sshll.u32 %s185_s22, 1  ;;  %p1534_p12 = pnand %p907_p5, %p154_p11 }
  0x38   : > { %s1390_s10 = smov [#allocation3]   ;;  %s926_s19 = sshll.u32 %s1380_s16, 5 }
  0x39   : > { %s1899_s9 = scalar_select %p1534_p12, 1, 0 }
  0x3a   : > { %s172_s11 = sshll.u32 %s1390_s10, 4  ;;  %p1136_p1 = pneg %p1534_p12  ;;  %s1538_s11 = int_to_ptr.vmem [resolvable:$true] %s172_s11 }
  0x3b   : > { %s1546_s23 = scalar_lea.hbm %s1886_s2, %s926_s19  ;;  %s211_s22 = scalar_lea.vmem [#allocation8], %s912_s8 }
  0x3c   : > { %s219_s25 = sshll.u32 %s211_s22, 4  ;;  %p1550_p13 = pnand %p1136_p1, %p1888_p0  ;;  %s220_s25 = int_to_ptr.vmem [resolvable:$true] %s219_s25 }
  0x3d   : > { %s1240_s27 = scalar_lea.hbm %s1546_s23, 32  ;;  %s1245_s19 = scalar_lea.hbm %s1886_s2, 128 }
  0x3e   : > { %s1900_s26 = scalar_select %p1550_p13, 1, 0 }
  0x3f   : > { %p1241_p10 = scmp.ne.s32.totalorder %s1546_s23, %s1240_s27  ;;  %p1246_p5 = scmp.lt.u32.totalorder %s1546_s23, %s1886_s2 }
  0x40   : > { %p1247_p11 = scmp.lt.u32.totalorder %s1245_s19, %s1240_s27  ;;  %p1249_p0 = scmp.lt.u32.totalorder %s1240_s27, %s1546_s23 }
  0x41   : > { %p1243_p2 = pnand %p1241_p10, %p1212_p8 }
  0x42   : > { %p1248_p1 = por %p1247_p11, %p1246_p5 }
  0x43   : > { %p1244_p3 = pneg %p1243_p2 }
  0x44   : > { %p1250_p9 = por %p1249_p0, %p1248_p1 }
  0x46   : > { %p1251_p7 = pnand %p1250_p9, %p1244_p3 }
  0x48   : > { %1254 = shalt.err (!%p1251_p7)
}
  0x49   : > { %s1255_s8 = scalar_lea.vmem %s220_s25, 32  ;;  %s1391_s22 = smov [#allocation8]  }
  0x4a   : > { %p1256_p4 = scmp.ne.s32.totalorder %s220_s25, %s1255_s8  ;;  %s1260_s6 = sshll.u32 %s1391_s22, 4  ;;  %s1261_s6 = int_to_ptr.vmem [resolvable:$false] %s1260_s6 }
  0x4b   : > { %s1262_s10 = scalar_lea.vmem %s1261_s6, 64  ;;  %p1263_p12 = scmp.lt.s32.totalorder %s220_s25, %s1261_s6 }
  0x4c   : > { %p1258_p10 = pnand %p1256_p4, %p1212_p8  ;;  %p1264_p13 = scmp.lt.s32.totalorder %s1262_s10, %s1255_s8 }
  0x4e   : > { %p1259_p2 = pneg %p1258_p10  ;;  %p1265_p5 = por %p1264_p13, %p1263_p12 }
  0x50   : > { %p1266_p11 = pnand %p1265_p5, %p1259_p2 }
  0x52   : > { %1269 = shalt.err (!%p1266_p11)
}
  0x53   : > { %1146 = dma.hbm_to_vmem [thread:$0]  (!%p1471_p6), %s1546_s23, 32, %s220_s25, %s1477_s5  }
  0x54   : > { %s1270_s20 = scalar_lea.hbm %s1884_s0, 192  ;;  %p1901_p0 = scmp.ne.s32.totalorder %s1900_s26, 0 }
  0x55   : > { %p1271_p8 = scmp.ne.s32.totalorder %s1884_s0, %s1270_s20  ;;  %p1277_p12 = scmp.lt.u32.totalorder %s1270_s20, %s1884_s0 }
  0x56   : > { %p1272_p4 = pneg %p1901_p0 }
  0x58   : > { %p1273_p7 = pnand %p1272_p4, %p1271_p8 }
  0x5a   : > { %p1274_p9 = pneg %p1273_p7 }
  0x5c   : > { %p1279_p13 = pnand %p1277_p12, %p1274_p9 }
  0x5e   : > { %1282 = shalt.err (!%p1279_p13)
}
  0x5f   : > { %s1283_s29 = scalar_lea.vmem %s1538_s11, 192  ;;  %p1291_p10 = scmp.lt.s32.totalorder %s1538_s11, %s1538_s11 }
  0x60   : > { %p1284_p6 = scmp.ne.s32.totalorder %s1538_s11, %s1283_s29  ;;  %p1292_p2 = scmp.lt.s32.totalorder %s1283_s29, %s1283_s29 }
  0x62   : > { %p1286_p3 = pnand %p1284_p6, %p1272_p4  ;;  %p1293_p5 = por %p1292_p2, %p1291_p10 }
  0x64   : > { %p1287_p1 = pneg %p1286_p3 }
  0x66   : > { %p1294_p11 = pnand %p1293_p5, %p1287_p1 }
  0x68   : > { %1297 = shalt.err (!%p1294_p11)
}
  0x69   : > { %1139 = dma.hbm_to_vmem [thread:$0]  (!%p1901_p0), %s1884_s0, 192, %s1538_s11, [#allocation4]  }
  0x6a   : > { %p1902_p8 = scmp.ne.s32.totalorder %s1899_s9, 0 }
  0x6b   : > { %p1903_p7 = scmp.eq.s32.totalorder (!%p1902_p8), %s1506_s30, 0 }
  0x6c   : > { %228 = sbr.rel (%p1902_p8) target bundleno = 497 (0x1f1), region = 32 }
  0x73   : > { %1351 = dma.done.wait (%p1903_p7), [#allocation4], 192   ;;  %p1904_p4 = pmov %p1903_p7 }
  0x74   : > { %s234_s23 = sand.u32 1, %s1506_s30   ;;  %s1603_s25 = sand.u32 1, %s1368_s13  }
  0x75   : > { %1353 = vsyncadd (%p1904_p4), [#allocation4], 4294967104  ;;  %s1125_s26 = smul.u32 1536, %s1603_s25  ;;  %s235_s6 = scalar_lea.sflag [#allocation7], %s234_s23 }
  0x76   : > { %p1905_p0 = scmp.ne.s32.totalorder %s1896_s7, 0 }
  0x77   : > { %s1606_s10 = scalar_lea.vmem [#allocation6], %s1125_s26 }
  0x78   : > { %1355 = dma.done.wait (%p1905_p0), %s235_s6, 24608  }
  0x79   : > { %1357 = vsyncadd (%p1905_p0), %s235_s6, 4294942688  ;;  %v353_v0 = vld [vmem:[%s1606_s10 + $0x208] sm:$0xff]  ;;  %v355_v1 = vld [vmem:[%s1606_s10 + $0x218] sm:$0xff]  ;;  %v1392_v29 = vmov 1983009808   ;;  %v486_v31 = vlaneseq  ;;  %s917_s30 = sshll.u32 %s1603_s25, 1 }
  0x7a   : > { %v352_v2 = vld [vmem:[%s1606_s10 + $0x200] sm:$0xff]  ;;  %v992_v3 = vpack.c.bf16 %v355_v1, %v353_v0  ;;  %v354_v4 = vld [vmem:[%s1606_s10 + $0x210] sm:$0xff]  ;;  %v357_v5 = vld [vmem:[%s1606_s10 + $0x228] sm:$0xff]  ;;  %v484_v30 = vunpack.c.l.s4 %v1392_v29  ;;  %s247_s7 = scalar_lea.vmem [#allocation8], %s917_s30  ;;  %s918_s9 = sshll.u32 %s1603_s25, 2 }
  0x7b   : > { %v359_v6 = vld [vmem:[%s1606_s10 + $0x238] sm:$0xff]  ;;  %v994_v7 = vpack.c.bf16 %v354_v4, %v352_v2  ;;  %v356_v9 = vld [vmem:[%s1606_s10 + $0x220] sm:$0xff]  ;;  %v358_v10 = vld [vmem:[%s1606_s10 + $0x230] sm:$0xff]  ;;  %v1636_v39 = vshrl.u32 %v486_v31, 7  ;;  %s927_s11 = sshll.u32 %s1376_s15, 6  ;;  %s274_s27 = scalar_lea.vmem [#allocation9], %s918_s9 }
  0x7c   : > { %v996_v8 = vpack.c.bf16 %v359_v6, %v357_v5  ;;  %v361_v11 = vld [vmem:[%s1606_s10 + $0x248] sm:$0xff]  ;;  %993 = vmatprep.subr.bf16.mxu0 %v992_v3  ;;  %v363_v12 = vld [vmem:[%s1606_s10 + $0x258] sm:$0xff]  ;;  %v998_v13 = vpack.c.bf16 %v358_v10, %v356_v9  ;;  %v360_v15 = vld [vmem:[%s1606_s10 + $0x240] sm:$0xff]  ;;  %v485_v38 = vunpack.c.0.s8 %v484_v30  ;;  %s781_s19 = sshll.u32 %s274_s27, 4  ;;  %s1836_s8 = scalar_lea.hbm %s1887_s3, %s927_s11  ;;  %s1838_s19 = int_to_ptr.vmem [resolvable:$true] %s781_s19 }
  0x7d   : > { %995 = vmatpush1.bf16.msra.mxu0 %v994_v7  ;;  %v1000_v14 = vpack.c.bf16 %v363_v12, %v361_v11  ;;  %v362_v16 = vld [vmem:[%s1606_s10 + $0x250] sm:$0xff]  ;;  %v365_v17 = vld [vmem:[%s1606_s10 + $0x268] sm:$0xff]  ;;  %v367_v18 = vld [vmem:[%s1606_s10 + $0x278] sm:$0xff]  ;;  %s765_s22 = scalar_lea.sflag [#allocation5], %s1603_s25  ;;  %s1298_s29 = scalar_lea.vmem %s1838_s19, 64 }
  0x7e   : > { %997 = vmatprep.subr.bf16.mxu0 %v996_v8  ;;  %v1002_v19 = vpack.c.bf16 %v362_v16, %v360_v15  ;;  %v1004_v20 = vpack.c.bf16 %v367_v18, %v365_v17  ;;  %v364_v21 = vld [vmem:[%s1606_s10 + $0x260] sm:$0xff]  ;;  %v366_v22 = vld [vmem:[%s1606_s10 + $0x270] sm:$0xff]  ;;  %v369_v23 = vld [vmem:[%s1606_s10 + $0x288] sm:$0xff]  ;;  %v1647_v50 = vsub.s32 %v485_v38, %v1636_v39  ;;  %p1299_p9 = scmp.ne.s32.totalorder %s1838_s19, %s1298_s29  ;;  %p1906_p12 = scmp.ne.s32.totalorder %s1897_s28, 0 }
  0x7f   : > { %v371_v24 = vld [vmem:[%s1606_s10 + $0x298] sm:$0xff]  ;;  %v1006_v25 = vpack.c.bf16 %v366_v22, %v364_v21  ;;  %v368_v27 = vld [vmem:[%s1606_s10 + $0x280] sm:$0xff]  ;;  %v370_v28 = vld [vmem:[%s1606_s10 + $0x290] sm:$0xff]  ;;  %s1394_s15 = smov [#allocation9]  }
  0x80   : > { %v1008_v26 = vpack.c.bf16 %v371_v24, %v369_v23  ;;  %v373_v32 = vld [vmem:[%s1606_s10 + $0x2a8] sm:$0xff]  ;;  %v375_v33 = vld [vmem:[%s1606_s10 + $0x2b8] sm:$0xff]  ;;  %v1010_v34 = vpack.c.bf16 %v370_v28, %v368_v27  ;;  %v372_v36 = vld [vmem:[%s1606_s10 + $0x2a0] sm:$0xff]  ;;  %p1300_p13 = pnand %p1299_p9, %p1906_p12  ;;  %s1302_s1 = sshll.u32 %s1394_s15, 4  ;;  %s1303_s1 = int_to_ptr.vmem [resolvable:$false] %s1302_s1 }
  0x81   : > { %999 = vmatpush1.bf16.msra.mxu0 %v998_v13  ;;  %v1012_v35 = vpack.c.bf16 %v375_v33, %v373_v32  ;;  %v374_v37 = vld [vmem:[%s1606_s10 + $0x2b0] sm:$0xff]  ;;  %v377_v40 = vld [vmem:[%s1606_s10 + $0x2c8] sm:$0xff]  ;;  %v379_v41 = vld [vmem:[%s1606_s10 + $0x2d8] sm:$0xff]  ;;  %s1304_s5 = scalar_lea.vmem %s1303_s1, 128  ;;  %p1305_p3 = scmp.lt.s32.totalorder %s1838_s19, %s1303_s1 }
  0x82   : > { %1001 = vmatprep.subr.bf16.mxu0 %v1000_v14  ;;  %v1014_v42 = vpack.c.bf16 %v374_v37, %v372_v36  ;;  %v376_v43 = vld [vmem:[%s1606_s10 + $0x2c0] sm:$0xff]  ;;  %v378_v44 = vld [vmem:[%s1606_s10 + $0x2d0] sm:$0xff]  ;;  %v381_v45 = vld [vmem:[%s1606_s10 + $0x2e8] sm:$0xff]  ;;  %v1016_v46 = vpack.c.bf16 %v379_v41, %v377_v40  ;;  %p1301_p6 = pneg %p1300_p13  ;;  %p1306_p1 = scmp.lt.s32.totalorder %s1304_s5, %s1298_s29 }
  0x83   : > { %v383_v47 = vld [vmem:[%s1606_s10 + $0x2f8] sm:$0xff]  ;;  %v289_v48 = vld [vmem:[%s1606_s10 + $0x8] sm:$0xff]  ;;  %v288_v52 = vld [vmem:[%s1606_s10] sm:$0xff]  ;;  %v1018_v58 = vpack.c.bf16 %v378_v44, %v376_v43 }
  0x84   : > { %v291_v49 = vld [vmem:[%s1606_s10 + $0x18] sm:$0xff]  ;;  %v290_v53 = vld [vmem:[%s1606_s10 + $0x10] sm:$0xff]  ;;  %v380_v59 = vld [vmem:[%s1606_s10 + $0x2e0] sm:$0xff]  ;;  %v1020_v62 = vpack.c.bf16 %v383_v47, %v381_v45  ;;  %p1307_p10 = por %p1306_p1, %p1305_p3 }
  0x85   : > { %1003 = vmatpush1.bf16.msra.mxu0 %v1002_v19  ;;  %v928_v51 = vpack.c.bf16 %v291_v49, %v289_v48  ;;  %v286_v54 = vld [vmem:[#allocation3] sm:$0xff]  ;;  %v930_v55 = vpack.c.bf16 %v290_v53, %v288_v52  ;;  %v293_v60 = vld [vmem:[%s1606_s10 + $0x28] sm:$0xff]  ;;  %v292_v2 = vld [vmem:[%s1606_s10 + $0x20] sm:$0xff] }
  0x86   : > { %1005 = vmatprep.subr.bf16.mxu0 %v1004_v20  ;;  %v482_v56 = vcombine.high %v286_v54, %v286_v54  ;;  %v1652_v57 = vrot.slane %v286_v54, %v1647_v50  ;;  %v295_v61 = vld [vmem:[%s1606_s10 + $0x38] sm:$0xff]  ;;  %v382_v63 = vld [vmem:[%s1606_s10 + $0x2f0] sm:$0xff]  ;;  %v385_v4 = vld [vmem:[%s1606_s10 + $0x308] sm:$0xff]  ;;  %p1308_p2 = pnand %p1307_p10, %p1301_p6 }
  0x87   : > { %929 = vmatprep.subr.bf16.mxu1 %v928_v51  ;;  %v932_v1 = vpack.c.bf16 %v295_v61, %v293_v60  ;;  %v294_v3 = vld [vmem:[%s1606_s10 + $0x30] sm:$0xff]  ;;  %v387_v5 = vld [vmem:[%s1606_s10 + $0x318] sm:$0xff]  ;;  %v297_v9 = vld [vmem:[%s1606_s10 + $0x48] sm:$0xff]  ;;  %v1022_v12 = vpack.c.bf16 %v382_v63, %v380_v59 }
  0x88   : > { %931 = vmatpush1.bf16.msra.mxu1 %v930_v55  ;;  %v1659_v0 = vrot.slane %v482_v56, %v1647_v50  ;;  %v934_v6 = vpack.c.bf16 %v294_v3, %v292_v2  ;;  %v497_v7 = vcombine.high %v1652_v57, %v1652_v57  ;;  %v299_v10 = vld [vmem:[%s1606_s10 + $0x58] sm:$0xff]  ;;  %v296_v11 = vld [vmem:[%s1606_s10 + $0x40] sm:$0xff]  ;;  %v298_v14 = vld [vmem:[%s1606_s10 + $0x50] sm:$0xff]  ;;  %v1024_v15 = vpack.c.bf16 %v387_v5, %v385_v4 }
  0x89   : > { %1007 = vmatpush1.bf16.msra.mxu0 %v1006_v25  ;;  %933 = vmatprep.subr.bf16.mxu1 %v932_v1  ;;  %v936_v13 = vpack.c.bf16 %v299_v10, %v297_v9  ;;  %v384_v16 = vld [vmem:[%s1606_s10 + $0x300] sm:$0xff]  ;;  %v386_v17 = vld [vmem:[%s1606_s10 + $0x310] sm:$0xff]  ;;  %v301_v18 = vld [vmem:[%s1606_s10 + $0x68] sm:$0xff]  ;;  %v938_v21 = vpack.c.bf16 %v298_v14, %v296_v11 }
  0x8a   : > { %1009 = vmatprep.subr.bf16.mxu0 %v1008_v26  ;;  %v498_v8 = vcombine.high %v1659_v0, %v1659_v0  ;;  %577 = vmatprep.mubr.f32.mxu1 %v497_v7  ;;  %v389_v19 = vld [vmem:[%s1606_s10 + $0x328] sm:$0xff]  ;;  %v391_v20 = vld [vmem:[%s1606_s10 + $0x338] sm:$0xff]  ;;  %v300_v24 = vld [vmem:[%s1606_s10 + $0x60] sm:$0xff]  ;;  %v1026_v26 = vpack.c.bf16 %v386_v17, %v384_v16 }
  0x8b   : > { %v303_v22 = vld [vmem:[%s1606_s10 + $0x78] sm:$0xff]  ;;  %v302_v25 = vld [vmem:[%s1606_s10 + $0x70] sm:$0xff]  ;;  %v305_v27 = vld [vmem:[%s1606_s10 + $0x88] sm:$0xff]  ;;  %v1028_v29 = vpack.c.bf16 %v391_v20, %v389_v19 }
  0x8c   : > { %648 = vmatprep.mubr.f32.mxu0 %v498_v8  ;;  %935 = vmatpush1.bf16.msra.mxu1 %v934_v6  ;;  %v940_v23 = vpack.c.bf16 %v303_v22, %v301_v18  ;;  %v307_v28 = vld [vmem:[%s1606_s10 + $0x98] sm:$0xff]  ;;  %v388_v30 = vld [vmem:[%s1606_s10 + $0x320] sm:$0xff]  ;;  %v390_v31 = vld [vmem:[%s1606_s10 + $0x330] sm:$0xff] }
  0x8d   : > { %1011 = vmatpush1.bf16.msra.mxu0 %v1010_v34  ;;  %937 = vmatprep.subr.bf16.mxu1 %v936_v13  ;;  %v393_v32 = vld [vmem:[%s1606_s10 + $0x348] sm:$0xff]  ;;  %v395_v33 = vld [vmem:[%s1606_s10 + $0x358] sm:$0xff]  ;;  %v942_v34 = vpack.c.bf16 %v302_v25, %v300_v24  ;;  %v304_v36 = vld [vmem:[%s1606_s10 + $0x80] sm:$0xff]  ;;  %v1030_v38 = vpack.c.bf16 %v390_v31, %v388_v30 }
  0x8e   : > { %1013 = vmatprep.subr.bf16.mxu0 %v1012_v35  ;;  %v944_v35 = vpack.c.bf16 %v307_v28, %v305_v27  ;;  %v306_v37 = vld [vmem:[%s1606_s10 + $0x90] sm:$0xff]  ;;  %v309_v40 = vld [vmem:[%s1606_s10 + $0xa8] sm:$0xff]  ;;  %v311_v41 = vld [vmem:[%s1606_s10 + $0xb8] sm:$0xff] }
  0x8f   : > { %v392_v43 = vld [vmem:[%s1606_s10 + $0x340] sm:$0xff]  ;;  %v394_v44 = vld [vmem:[%s1606_s10 + $0x350] sm:$0xff]  ;;  %v397_v45 = vld [vmem:[%s1606_s10 + $0x368] sm:$0xff]  ;;  %v946_v47 = vpack.c.bf16 %v306_v37, %v304_v36  ;;  %v948_v48 = vpack.c.bf16 %v311_v41, %v309_v40 }
  0x90   : > { %939 = vmatpush1.bf16.msra.mxu1 %v938_v21  ;;  %v308_v49 = vld [vmem:[%s1606_s10 + $0xa0] sm:$0xff]  ;;  %v310_v51 = vld [vmem:[%s1606_s10 + $0xb0] sm:$0xff]  ;;  %v1034_v52 = vpack.c.bf16 %v394_v44, %v392_v43  ;;  %v313_v53 = vld [vmem:[%s1606_s10 + $0xc8] sm:$0xff] }
  0x91   : > { %1015 = vmatpush1.bf16.msra.mxu0 %v1014_v42  ;;  %941 = vmatprep.subr.bf16.mxu1 %v940_v23  ;;  %v1032_v42 = vpack.c.bf16 %v395_v33, %v393_v32  ;;  %v315_v54 = vld [vmem:[%s1606_s10 + $0xd8] sm:$0xff]  ;;  %v396_v56 = vld [vmem:[%s1606_s10 + $0x360] sm:$0xff]  ;;  %v401_v59 = vld [vmem:[%s1606_s10 + $0x388] sm:$0xff]  ;;  %v950_v61 = vpack.c.bf16 %v310_v51, %v308_v49 }
  0x92   : > { %1017 = vmatprep.subr.bf16.mxu0 %v1016_v46  ;;  %v399_v46 = vld [vmem:[%s1606_s10 + $0x378] sm:$0xff]  ;;  %v312_v63 = vld [vmem:[%s1606_s10 + $0xc0] sm:$0xff]  ;;  %v314_v1 = vld [vmem:[%s1606_s10 + $0xd0] sm:$0xff] }
  0x93   : > { %v1036_v55 = vpack.c.bf16 %v399_v46, %v397_v45  ;;  %v403_v60 = vld [vmem:[%s1606_s10 + $0x398] sm:$0xff]  ;;  %v317_v3 = vld [vmem:[%s1606_s10 + $0xe8] sm:$0xff]  ;;  %v400_v6 = vld [vmem:[%s1606_s10 + $0x380] sm:$0xff]  ;;  %v954_v10 = vpack.c.bf16 %v314_v1, %v312_v63 }
  0x94   : > { %943 = vmatpush1.bf16.msra.mxu1 %v942_v34  ;;  %v319_v4 = vld [vmem:[%s1606_s10 + $0xf8] sm:$0xff]  ;;  %v1040_v5 = vpack.c.bf16 %v403_v60, %v401_v59  ;;  %v402_v7 = vld [vmem:[%s1606_s10 + $0x390] sm:$0xff]  ;;  %v405_v8 = vld [vmem:[%s1606_s10 + $0x3a8] sm:$0xff] }
  0x95   : > { %1019 = vmatpush1.bf16.msra.mxu0 %v1018_v58  ;;  %945 = vmatprep.subr.bf16.mxu1 %v944_v35  ;;  %v398_v58 = vld [vmem:[%s1606_s10 + $0x370] sm:$0xff]  ;;  %v407_v9 = vld [vmem:[%s1606_s10 + $0x3b8] sm:$0xff]  ;;  %v956_v11 = vpack.c.bf16 %v319_v4, %v317_v3  ;;  %v1042_v14 = vpack.c.bf16 %v402_v7, %v400_v6  ;;  %v404_v18 = vld [vmem:[%s1606_s10 + $0x3a0] sm:$0xff] }
  0x96   : > { %1021 = vmatprep.subr.bf16.mxu0 %v1020_v62  ;;  %v952_v62 = vpack.c.bf16 %v315_v54, %v313_v53  ;;  %v1038_v2 = vpack.c.bf16 %v398_v58, %v396_v56  ;;  %v318_v13 = vld [vmem:[%s1606_s10 + $0xf0] sm:$0xff]  ;;  %v323_v16 = vld [vmem:[%s1606_s10 + $0x118] sm:$0xff]  ;;  %v1044_v17 = vpack.c.bf16 %v407_v9, %v405_v8  ;;  %v409_v20 = vld [vmem:[%s1606_s10 + $0x3c8] sm:$0xff] }
  0x97   : > { %v406_v19 = vld [vmem:[%s1606_s10 + $0x3b0] sm:$0xff]  ;;  %v411_v21 = vld [vmem:[%s1606_s10 + $0x3d8] sm:$0xff]  ;;  %v320_v24 = vld [vmem:[%s1606_s10 + $0x100] sm:$0xff] }
  0x98   : > { %947 = vmatpush1.bf16.msra.mxu1 %v946_v47  ;;  %v322_v25 = vld [vmem:[%s1606_s10 + $0x110] sm:$0xff]  ;;  %v325_v27 = vld [vmem:[%s1606_s10 + $0x128] sm:$0xff]  ;;  %v327_v28 = vld [vmem:[%s1606_s10 + $0x138] sm:$0xff] }
  0x99   : > { %1023 = vmatpush1.bf16.msra.mxu0 %v1022_v12  ;;  %949 = vmatprep.subr.bf16.mxu1 %v948_v48  ;;  %v316_v12 = vld [vmem:[%s1606_s10 + $0xe0] sm:$0xff]  ;;  %v410_v31 = vld [vmem:[%s1606_s10 + $0x3d0] sm:$0xff]  ;;  %v413_v32 = vld [vmem:[%s1606_s10 + $0x3e8] sm:$0xff]  ;;  %v962_v34 = vpack.c.bf16 %v322_v25, %v320_v24  ;;  %v964_v35 = vpack.c.bf16 %v327_v28, %v325_v27 }
  0x9a   : > { %1025 = vmatprep.subr.bf16.mxu0 %v1024_v15  ;;  %v321_v15 = vld [vmem:[%s1606_s10 + $0x108] sm:$0xff]  ;;  %v958_v22 = vpack.c.bf16 %v318_v13, %v316_v12  ;;  %v408_v30 = vld [vmem:[%s1606_s10 + $0x3c0] sm:$0xff]  ;;  %v415_v33 = vld [vmem:[%s1606_s10 + $0x3f8] sm:$0xff] }
  0x9b   : > { %v960_v23 = vpack.c.bf16 %v323_v16, %v321_v15  ;;  %v324_v36 = vld [vmem:[%s1606_s10 + $0x120] sm:$0xff]  ;;  %v326_v37 = vld [vmem:[%s1606_s10 + $0x130] sm:$0xff]  ;;  %v329_v40 = vld [vmem:[%s1606_s10 + $0x148] sm:$0xff] }
  0x9c   : > { %951 = vmatpush1.bf16.msra.mxu1 %v950_v61  ;;  %v331_v41 = vld [vmem:[%s1606_s10 + $0x158] sm:$0xff]  ;;  %v412_v43 = vld [vmem:[%s1606_s10 + $0x3e0] sm:$0xff]  ;;  %v414_v44 = vld [vmem:[%s1606_s10 + $0x3f0] sm:$0xff]  ;;  %v966_v47 = vpack.c.bf16 %v326_v37, %v324_v36 }
  0x9d   : > { %1027 = vmatpush1.bf16.msra.mxu0 %v1026_v26  ;;  %953 = vmatprep.subr.bf16.mxu1 %v952_v62  ;;  %v1046_v26 = vpack.c.bf16 %v406_v19, %v404_v18  ;;  %v417_v45 = vld [vmem:[%s1606_s10 + $0x408] sm:$0xff]  ;;  %v419_v46 = vld [vmem:[%s1606_s10 + $0x418] sm:$0xff]  ;;  %v968_v48 = vpack.c.bf16 %v331_v41, %v329_v40  ;;  %v328_v49 = vld [vmem:[%s1606_s10 + $0x140] sm:$0xff] }
  0x9e   : > { %1029 = vmatprep.subr.bf16.mxu0 %v1028_v29  ;;  %v1048_v29 = vpack.c.bf16 %v411_v21, %v409_v20  ;;  %v330_v51 = vld [vmem:[%s1606_s10 + $0x150] sm:$0xff]  ;;  %v333_v53 = vld [vmem:[%s1606_s10 + $0x168] sm:$0xff]  ;;  %v335_v54 = vld [vmem:[%s1606_s10 + $0x178] sm:$0xff] }
  0x9f   : > { %v416_v56 = vld [vmem:[%s1606_s10 + $0x400] sm:$0xff]  ;;  %v418_v58 = vld [vmem:[%s1606_s10 + $0x410] sm:$0xff]  ;;  %v421_v59 = vld [vmem:[%s1606_s10 + $0x428] sm:$0xff]  ;;  %v970_v61 = vpack.c.bf16 %v330_v51, %v328_v49  ;;  %v972_v62 = vpack.c.bf16 %v335_v54, %v333_v53 }
  0xa0   : > { %955 = vmatpush1.bf16.msra.mxu1 %v954_v10  ;;  %v423_v60 = vld [vmem:[%s1606_s10 + $0x438] sm:$0xff]  ;;  %v332_v63 = vld [vmem:[%s1606_s10 + $0x160] sm:$0xff]  ;;  %v334_v1 = vld [vmem:[%s1606_s10 + $0x170] sm:$0xff] }
  0xa1   : > { %1031 = vmatpush1.bf16.msra.mxu0 %v1030_v38  ;;  %957 = vmatprep.subr.bf16.mxu1 %v956_v11  ;;  %v1050_v38 = vpack.c.bf16 %v410_v31, %v408_v30  ;;  %v337_v3 = vld [vmem:[%s1606_s10 + $0x188] sm:$0xff]  ;;  %v339_v4 = vld [vmem:[%s1606_s10 + $0x198] sm:$0xff]  ;;  %v1060_v6 = vpack.c.bf16 %v423_v60, %v421_v59  ;;  %v420_v7 = vld [vmem:[%s1606_s10 + $0x420] sm:$0xff]  ;;  %v974_v12 = vpack.c.bf16 %v334_v1, %v332_v63 }
  0xa2   : > { %1033 = vmatprep.subr.bf16.mxu0 %v1032_v42  ;;  %v1052_v42 = vpack.c.bf16 %v415_v33, %v413_v32  ;;  %v422_v8 = vld [vmem:[%s1606_s10 + $0x430] sm:$0xff]  ;;  %v425_v10 = vld [vmem:[%s1606_s10 + $0x448] sm:$0xff]  ;;  %v427_v11 = vld [vmem:[%s1606_s10 + $0x458] sm:$0xff]  ;;  %v976_v13 = vpack.c.bf16 %v339_v4, %v337_v3 }
  0xa3   : > { %v338_v15 = vld [vmem:[%s1606_s10 + $0x190] sm:$0xff]  ;;  %v1062_v16 = vpack.c.bf16 %v422_v8, %v420_v7  ;;  %v343_v18 = vld [vmem:[%s1606_s10 + $0x1b8] sm:$0xff]  ;;  %v1064_v19 = vpack.c.bf16 %v427_v11, %v425_v10  ;;  %v424_v20 = vld [vmem:[%s1606_s10 + $0x440] sm:$0xff] }
  0xa4   : > { %959 = vmatpush1.bf16.msra.mxu1 %v958_v22  ;;  %v426_v21 = vld [vmem:[%s1606_s10 + $0x450] sm:$0xff]  ;;  %v431_v22 = vld [vmem:[%s1606_s10 + $0x478] sm:$0xff]  ;;  %v340_v25 = vld [vmem:[%s1606_s10 + $0x1a0] sm:$0xff] }
  0xa5   : > { %1035 = vmatpush1.bf16.msra.mxu0 %v1034_v52  ;;  %961 = vmatprep.subr.bf16.mxu1 %v960_v23  ;;  %v1054_v52 = vpack.c.bf16 %v414_v44, %v412_v43  ;;  %v1066_v27 = vpack.c.bf16 %v426_v21, %v424_v20  ;;  %v345_v28 = vld [vmem:[%s1606_s10 + $0x1c8] sm:$0xff]  ;;  %v428_v31 = vld [vmem:[%s1606_s10 + $0x460] sm:$0xff]  ;;  %v430_v32 = vld [vmem:[%s1606_s10 + $0x470] sm:$0xff] }
  0xa6   : > { %1037 = vmatprep.subr.bf16.mxu0 %v1036_v55  ;;  %v1056_v55 = vpack.c.bf16 %v419_v46, %v417_v45  ;;  %v433_v33 = vld [vmem:[%s1606_s10 + $0x488] sm:$0xff]  ;;  %v344_v37 = vld [vmem:[%s1606_s10 + $0x1c0] sm:$0xff]  ;;  %v1070_v40 = vpack.c.bf16 %v430_v32, %v428_v31  ;;  %v434_v45 = vld [vmem:[%s1606_s10 + $0x490] sm:$0xff] }
  0xa7   : > { %v349_v41 = vld [vmem:[%s1606_s10 + $0x1e8] sm:$0xff]  ;;  %v432_v44 = vld [vmem:[%s1606_s10 + $0x480] sm:$0xff]  ;;  %v443_v59 = vld [vmem:[%s1606_s10 + $0x4d8] sm:$0xff] }
  0xa8   : > { %963 = vmatpush1.bf16.msra.mxu1 %v962_v34  ;;  %v435_v34 = vld [vmem:[%s1606_s10 + $0x498] sm:$0xff]  ;;  %v437_v46 = vld [vmem:[%s1606_s10 + $0x4a8] sm:$0xff]  ;;  %v348_v51 = vld [vmem:[%s1606_s10 + $0x1e0] sm:$0xff]  ;;  %v1074_v53 = vpack.c.bf16 %v434_v45, %v432_v44 }
  0xa9   : > { %1039 = vmatpush1.bf16.msra.mxu0 %v1038_v2  ;;  %965 = vmatprep.subr.bf16.mxu1 %v964_v35  ;;  %v1058_v2 = vpack.c.bf16 %v418_v58, %v416_v56  ;;  %v1072_v43 = vpack.c.bf16 %v435_v34, %v433_v33  ;;  %v438_v56 = vld [vmem:[%s1606_s10 + $0x4b0] sm:$0xff]  ;;  %v441_v58 = vld [vmem:[%s1606_s10 + $0x4c8] sm:$0xff]  ;;  %v440_v63 = vld [vmem:[%s1606_s10 + $0x4c0] sm:$0xff] }
  0xaa   : > { %1041 = vmatprep.subr.bf16.mxu0 %v1040_v5  ;;  %v1747_v5 = vld.sshfl [vmem:[#allocation3 + $0x8] sm:$0x33 pattern:$0x76325410]  ;;  %v442_v1 = vld [vmem:[%s1606_s10 + $0x4d0] sm:$0xff]  ;;  %v444_v7 = vld [vmem:[%s1606_s10 + $0x4e0] sm:$0xff] }
  0xab   : > { %v506_v9 = vcombine.high %v1747_v5, %v1747_v5  ;;  %v447_v3 = vld [vmem:[%s1606_s10 + $0x4f8] sm:$0xff]  ;;  %v1082_v4 = vpack.c.bf16 %v442_v1, %v440_v63  ;;  %v446_v8 = vld [vmem:[%s1606_s10 + $0x4f0] sm:$0xff]  ;;  %v457_v20 = vld [vmem:[%s1606_s10 + $0x548] sm:$0xff] }
  0xac   : > { %967 = vmatpush1.bf16.msra.mxu1 %v966_v47  ;;  %v439_v47 = vld [vmem:[%s1606_s10 + $0x4b8] sm:$0xff]  ;;  %v1086_v11 = vpack.c.bf16 %v446_v8, %v444_v7  ;;  %v465_v31 = vld [vmem:[%s1606_s10 + $0x588] sm:$0xff] }
  0xad   : > { %1043 = vmatpush1.bf16.msra.mxu0 %v1042_v14  ;;  %969 = vmatprep.subr.bf16.mxu1 %v968_v48  ;;  %v336_v14 = vld [vmem:[%s1606_s10 + $0x180] sm:$0xff]  ;;  %v1076_v54 = vpack.c.bf16 %v439_v47, %v437_v46  ;;  %v451_v10 = vld [vmem:[%s1606_s10 + $0x518] sm:$0xff]  ;;  %v473_v44 = vld [vmem:[%s1606_s10 + $0x5c8] sm:$0xff] }
  0xae   : > { %1045 = vmatprep.subr.bf16.mxu0 %v1044_v17  ;;  %v341_v17 = vld [vmem:[%s1606_s10 + $0x1a8] sm:$0xff]  ;;  %v978_v23 = vpack.c.bf16 %v338_v15, %v336_v14  ;;  %v450_v14 = vld [vmem:[%s1606_s10 + $0x510] sm:$0xff]  ;;  %v459_v21 = vld [vmem:[%s1606_s10 + $0x558] sm:$0xff] }
  0xaf   : > { %v980_v24 = vpack.c.bf16 %v343_v18, %v341_v17  ;;  %v453_v15 = vld [vmem:[%s1606_s10 + $0x528] sm:$0xff]  ;;  %v452_v18 = vld [vmem:[%s1606_s10 + $0x520] sm:$0xff]  ;;  %v467_v32 = vld [vmem:[%s1606_s10 + $0x598] sm:$0xff] }
  0xb0   : > { %971 = vmatpush1.bf16.msra.mxu1 %v970_v61  ;;  %v1104_v34 = vpack.c.bf16 %v467_v32, %v465_v31  ;;  %v475_v45 = vld [vmem:[%s1606_s10 + $0x5d8] sm:$0xff] }
  0xb1   : > { %1047 = vmatpush1.bf16.msra.mxu0 %v1046_v26  ;;  %973 = vmatprep.subr.bf16.mxu1 %v972_v62  ;;  %v342_v26 = vld [vmem:[%s1606_s10 + $0x1b0] sm:$0xff]  ;;  %v1080_v62 = vpack.c.bf16 %v443_v59, %v441_v58  ;;  %v1112_v47 = vpack.c.bf16 %v475_v45, %v473_v44  ;;  %v1393_v59 = vmov 0.0  }
  0xb2   : > { %1049 = vmatprep.subr.bf16.mxu0 %v1048_v29  ;;  %v347_v29 = vld [vmem:[%s1606_s10 + $0x1d8] sm:$0xff]  ;;  %v982_v35 = vpack.c.bf16 %v342_v26, %v340_v25  ;;  %v461_v25 = vld [vmem:[%s1606_s10 + $0x568] sm:$0xff]  ;;  %284 = vst [vmem:[#allocation2] sm:$0xf] %v1393_v59 }
  0xb3   : > { %v984_v36 = vpack.c.bf16 %v347_v29, %v345_v28  ;;  %v463_v26 = vld [vmem:[%s1606_s10 + $0x578] sm:$0xff]  ;;  %v460_v29 = vld [vmem:[%s1606_s10 + $0x560] sm:$0xff] }
  0xb4   : > { %975 = vmatpush1.bf16.msra.mxu1 %v974_v12  ;;  %v1100_v28 = vpack.c.bf16 %v463_v26, %v461_v25 }
  0xb5   : > { %1051 = vmatpush1.bf16.msra.mxu0 %v1050_v38  ;;  %977 = vmatprep.subr.bf16.mxu1 %v976_v13  ;;  %v346_v38 = vld [vmem:[%s1606_s10 + $0x1d0] sm:$0xff]  ;;  %v448_v13 = vld [vmem:[%s1606_s10 + $0x500] sm:$0xff] }
  0xb6   : > { %1053 = vmatprep.subr.bf16.mxu0 %v1052_v42  ;;  %v351_v42 = vld [vmem:[%s1606_s10 + $0x1f8] sm:$0xff]  ;;  %v986_v48 = vpack.c.bf16 %v346_v38, %v344_v37  ;;  %v1090_v17 = vpack.c.bf16 %v450_v14, %v448_v13  ;;  %v469_v37 = vld [vmem:[%s1606_s10 + $0x5a8] sm:$0xff] }
  0xb7   : > { %v988_v49 = vpack.c.bf16 %v351_v42, %v349_v41  ;;  %v471_v38 = vld [vmem:[%s1606_s10 + $0x5b8] sm:$0xff]  ;;  %v468_v42 = vld [vmem:[%s1606_s10 + $0x5a0] sm:$0xff] }
  0xb8   : > { %979 = vmatpush1.bf16.msra.mxu1 %v978_v23  ;;  %v456_v23 = vld [vmem:[%s1606_s10 + $0x540] sm:$0xff]  ;;  %v1108_v41 = vpack.c.bf16 %v471_v38, %v469_v37 }
  0xb9   : > { %1055 = vmatpush1.bf16.msra.mxu0 %v1054_v52  ;;  %981 = vmatprep.subr.bf16.mxu1 %v980_v24  ;;  %v350_v52 = vld [vmem:[%s1606_s10 + $0x1f0] sm:$0xff] }
  0xba   : > { %1057 = vmatprep.subr.bf16.mxu0 %v1056_v55  ;;  %v436_v55 = vld [vmem:[%s1606_s10 + $0x4a0] sm:$0xff]  ;;  %v990_v60 = vpack.c.bf16 %v350_v52, %v348_v51  ;;  %v458_v24 = vld [vmem:[%s1606_s10 + $0x550] sm:$0xff]  ;;  %v477_v51 = vld [vmem:[%s1606_s10 + $0x5e8] sm:$0xff] }
  0xbb   : > { %v1078_v61 = vpack.c.bf16 %v438_v56, %v436_v55  ;;  %v479_v52 = vld [vmem:[%s1606_s10 + $0x5f8] sm:$0xff]  ;;  %v476_v55 = vld [vmem:[%s1606_s10 + $0x5e0] sm:$0xff]  ;;  %v478_v56 = vld [vmem:[%s1606_s10 + $0x5f0] sm:$0xff] }
  0xbc   : > { %649 = vmatmul.mubr.f32.vlgmr.msra.gmra.mrb[0].mxu0 %v1659_v0  ;;  %v429_v0 = vld [vmem:[%s1606_s10 + $0x468] sm:$0xff]  ;;  %983 = vmatpush1.bf16.msra.mxu1 %v982_v35  ;;  %v464_v35 = vld [vmem:[%s1606_s10 + $0x580] sm:$0xff]  ;;  %v1118_v58 = vpack.c.bf16 %v478_v56, %v476_v55  ;;  %v285_v8 = vld [vmem:[#allocation2] sm:$0xf] }
  0xbd   : > { %1059 = vmatpush1.bf16.msra.mxu0 %v1058_v2  ;;  %719 = vmatprep.mubr.f32.mxu0 %v506_v9  ;;  %v1068_v30 = vpack.c.bf16 %v431_v22, %v429_v0  ;;  %v445_v2 = vld [vmem:[%s1606_s10 + $0x4e8] sm:$0xff]  ;;  %v1096_v22 = vpack.c.bf16 %v459_v21, %v457_v20 }
  0xbe   : > { %1061 = vmatprep.subr.bf16.mxu0 %v1060_v6  ;;  %985 = vmatprep.subr.bf16.mxu1 %v984_v36  ;;  %v1084_v6 = vpack.c.bf16 %v447_v3, %v445_v2  ;;  %v449_v9 = vld [vmem:[%s1606_s10 + $0x508] sm:$0xff]  ;;  %v466_v36 = vld [vmem:[%s1606_s10 + $0x590] sm:$0xff]  ;;  %v747_v3 = vsub.s32 0, %v1636_v39 }
  0xbf   : > { %v1088_v12 = vpack.c.bf16 %v451_v10, %v449_v9 }
  0xc0   : > { %987 = vmatpush1.bf16.msra.mxu1 %v986_v48  ;;  %v472_v48 = vld [vmem:[%s1606_s10 + $0x5c0] sm:$0xff] }
  0xc1   : > { %1063 = vmatpush1.bf16.msra.mxu0 %v1062_v16  ;;  %989 = vmatprep.subr.bf16.mxu1 %v988_v49  ;;  %v455_v16 = vld [vmem:[%s1606_s10 + $0x538] sm:$0xff]  ;;  %v474_v49 = vld [vmem:[%s1606_s10 + $0x5d0] sm:$0xff] }
  0xc2   : > { %1065 = vmatprep.subr.bf16.mxu0 %v1064_v19  ;;  %v454_v19 = vld [vmem:[%s1606_s10 + $0x530] sm:$0xff] }
  0xc3   : > { %v1094_v0 = vpack.c.bf16 %v454_v19, %v452_v18 }
  0xc4   : > { %991 = vmatpush1.bf16.msra.mxu1 %v990_v60 }
  0xc5   : > { %1067 = vmatpush1.bf16.msra.mxu0 %v1066_v27  ;;  %v1098_v27 = vpack.c.bf16 %v458_v24, %v456_v23 }
  0xc6   : > { %1069 = vmatprep.subr.bf16.mxu0 %v1068_v30  ;;  %v462_v30 = vld [vmem:[%s1606_s10 + $0x570] sm:$0xff] }
  0xc7   : > { %578 = vmatmul.mubr.f32.vlgmr.msra.gmra.mrb[0].mxu1 %v1652_v57  ;;  %v1092_v57 = vpack.c.bf16 %v455_v16, %v453_v15  ;;  %v1102_v33 = vpack.c.bf16 %v462_v30, %v460_v29 }
  0xc9   : > { %1071 = vmatpush1.bf16.msra.mxu0 %v1070_v40  ;;  %v1106_v40 = vpack.c.bf16 %v466_v36, %v464_v35 }
  0xca   : > { %1073 = vmatprep.subr.bf16.mxu0 %v1072_v43  ;;  %v470_v43 = vld [vmem:[%s1606_s10 + $0x5b0] sm:$0xff] }
  0xcb   : > { %v1110_v46 = vpack.c.bf16 %v470_v43, %v468_v42 }
  0xcd   : > { %1075 = vmatpush1.bf16.msra.mxu0 %v1074_v53  ;;  %v1114_v53 = vpack.c.bf16 %v474_v49, %v472_v48 }
  0xce   : > { %1077 = vmatprep.subr.bf16.mxu0 %v1076_v54  ;;  %v1116_v54 = vpack.c.bf16 %v479_v52, %v477_v51 }
  0xd1   : > { %1079 = vmatpush1.bf16.msra.mxu0 %v1078_v61 }
  0xd2   : > { %1081 = vmatprep.subr.bf16.mxu0 %v1080_v62 }
  0xd5   : > { %1083 = vmatpush1.bf16.msra.mxu0 %v1082_v4  ;;  %v751_v4 = vsub.s32 1, %v1636_v39 }
  0xd6   : > { %1085 = vmatprep.subr.bf16.mxu0 %v1084_v6  ;;  %v743_v6 = vld [vmem:[%s247_s7] sm:$0x3] }
  0xd7   : > { %v748_v9 = vrot.slane %v743_v6, %v747_v3  ;;  %v752_v10 = vrot.slane %v743_v6, %v751_v4 }
  0xd9   : > { %1087 = vmatpush1.bf16.msra.mxu0 %v1086_v11 }
  0xda   : > { %1089 = vmatprep.subr.bf16.mxu0 %v1088_v12  ;;  %v753_v12 = vcombine.low %v748_v9, %v752_v10 }
  0xdc   : > { %v760_v13 = vrot.slane %v753_v12, %v1647_v50 }
  0xdd   : > { %1091 = vmatpush1.bf16.msra.mxu0 %v1090_v17 }
  0xde   : > { %1093 = vmatprep.subr.bf16.mxu0 %v1092_v57 }
  0xe1   : > { %1095 = vmatpush1.bf16.msra.mxu0 %v1094_v0 }
  0xe2   : > { %1097 = vmatprep.subr.bf16.mxu0 %v1096_v22 }
  0xe5   : > { %1099 = vmatpush1.bf16.msra.mxu0 %v1098_v27 }
  0xe6   : > { %1101 = vmatprep.subr.bf16.mxu0 %v1100_v28 }
  0xe9   : > { %1103 = vmatpush1.bf16.msra.mxu0 %v1102_v33 }
  0xea   : > { %1105 = vmatprep.subr.bf16.mxu0 %v1104_v34 }
  0xed   : > { %1107 = vmatpush1.bf16.msra.mxu0 %v1106_v40 }
  0xee   : > { %1109 = vmatprep.subr.bf16.mxu0 %v1108_v41 }
  0xf1   : > { %1111 = vmatpush1.bf16.msra.mxu0 %v1110_v46 }
  0xf2   : > { %1113 = vmatprep.subr.bf16.mxu0 %v1112_v47 }
  0xf5   : > { %1115 = vmatpush1.bf16.msra.mxu0 %v1114_v53 }
  0xf6   : > { %1117 = vmatprep.subr.bf16.mxu0 %v1116_v54 }
  0xf9   : > { %1119 = vmatpush1.bf16.msra.mxu0 %v1118_v58 }
  0xfc   : > { %720 = vmatmul.mubr.f32.vlgmr.msra.gmra.mrb[0].mxu0 %v1747_v5 }
 0x19a   : > { %v579_v60 = vpop.f32.mrb[0].mxu1 }
 0x19b   : > { %v581_v61 = vpop.f32.mrb[1].mxu1 }
 0x1cf   : > { %v721_v62 = vpop.f32.mrb[0].mxu0 }
 0x1d0   : > { %v1120_v63 = vadd.f32 %v721_v62, %v579_v60  ;;  %v723_v1 = vpop.f32.mrb[1].mxu0 }
 0x1d1   : > { %v1121_v2 = vadd.f32 %v723_v1, %v581_v61 }
 0x1d3   : > { %v728_v7 = vcombine.low %v1120_v63, %v1121_v2 }
 0x1d5   : > { %v735_v5 = vrot.slane %v728_v7, %v1647_v50 }
 0x1d7   : > { %v737_v11 = vadd.f32 %v735_v5, %v285_v8 }
 0x1d9   : > { %738 = vst [vmem:[#allocation2] sm:$0xf] %v737_v11 }
 0x1e0   : > { %v742_v39 = vld [vmem:[#allocation2] sm:$0xf] }
 0x1e1   : > { %v762_v14 = vadd.f32 %v760_v13, %v742_v39 }
 0x1e3   : > { %763 = vst [vmem:[%s274_s27] sm:$0xf] %v762_v14 }
 0x1e4   : > { %1311 = shalt.err (!%p1308_p2)
}
 0x1e5   : > { %s1312_s23 = scalar_lea.hbm %s1836_s8, 64  ;;  %s1316_s6 = scalar_lea.hbm %s1887_s3, 256 }
 0x1e6   : > { %p1313_p5 = scmp.ne.s32.totalorder %s1836_s8, %s1312_s23  ;;  %p1317_p7 = scmp.lt.u32.totalorder %s1836_s8, %s1887_s3 }
 0x1e7   : > { %p1318_p4 = scmp.lt.u32.totalorder %s1316_s6, %s1312_s23  ;;  %p1320_p9 = scmp.lt.u32.totalorder %s1312_s23, %s1836_s8 }
 0x1e8   : > { %p1314_p11 = pnand %p1313_p5, %p1906_p12 }
 0x1e9   : > { %p1319_p0 = por %p1318_p4, %p1317_p7 }
 0x1ea   : > { %p1315_p8 = pneg %p1314_p11 }
 0x1eb   : > { %p1321_p13 = por %p1320_p9, %p1319_p0 }
 0x1ed   : > { %p1322_p6 = pnand %p1321_p13, %p1315_p8 }
 0x1ef   : > { %1325 = shalt.err (!%p1322_p6)
}
 0x1f0   : > { %1134 = dma.vmem_to_hbm [thread:$0]  (%p1906_p12), %s1838_s19, 64, %s1836_s8, %s765_s22  }
 0x1f1 PF: > { %p1154_p3 = scmp.ge.s32.totalorder %s1384_s17, 2  ;;  %s793_s7 = sand.u32 1, %s1364_s12  }
 0x1f2   : > { %p1907_p1 = scmp.ne.s32.totalorder %s1898_s4, 0  ;;  %s794_s9 = scalar_lea.sflag [#allocation5], %s793_s7 }
 0x1f4   : > { %p1148_p10 = pnand %p1154_p3, %p1907_p1 }
 0x1f6   : > { %1359 = dma.done.wait (!%p1148_p10), %s794_s9, 64  }
 0x1f7   : > { %1361 = vsyncadd (!%p1148_p10), %s794_s9, 4294967232  ;;  %s20_s17 = sadd.s32 1, %s1384_s17   ;;  %s1908_s12 = smov %s1368_s13 }
 0x1f8   : > { %p17_p2 = scmp.ge.s32.totalorder %s20_s17, 6   ;;  %s1909_s13 = smov %s1372_s14 }
 0x1f9   : > { %s1910_s14 = smov %s1462_s24  ;;  %s1911_s15 = smov %s1380_s16 }
 0x1fa   : > { %s1912_s16 = smov %s1914_s18  ;;  %19 = sbr.rel (!%p17_p2) target bundleno = 9 (0x9), region = 102 }
 0x201   :  { %799 = vsyncpa [#allocation4], 1 }
 0x202   :  { %801 = vsyncpa [#allocation4 + $0x1], 1 }
 0x203   :  { %802 = vsyncpa [#allocation7], 1 }
 0x204   :  { %804 = vsyncpa [#allocation7 + $0x1], 1 }
 0x205   :  { %805 = vsyncpa [#allocation5], 1 }
 0x206   :  { %807 = vsyncpa [#allocation5 + $0x1], 1 }

</bundles_post_ra>
